<compile_context>
chip_gen: v6e
topology: v6e:2x2x1
jax: 0.10.0
libtpu: 0.0.40
codegen_flags: <defaults>
</compile_context>

<pallas_src>
import functools
import math
from typing import NamedTuple

import jax
import jax.numpy as jnp
from jax.experimental import pallas as pl
from jax.experimental.pallas import tpu as pltpu


def _round_up(x, m):
    return ((x + m - 1) // m) * m


def _cdiv(a, b):
    return (a + b - 1) // b


def _vmem_tile_bytes(shape, itemsize):
    """Conservative VMEM footprint of a 2-D tile after (sublane, lane) padding."""
    r, c = shape
    sublane = 8 * (4 // itemsize)          # f32 -> 8 rows/tile, bf16 -> 16
    return _round_up(max(r, 1), sublane) * _round_up(max(c, 1), 128) * itemsize


class TimestepEmbedderParams(NamedTuple):
    freqs: jax.Array   # (1, half)      f32
    w1: jax.Array      # (2*half, Hp)   bf16  (W1.T: rows [cos-feats; sin-feats], hidden padded)
    b1: jax.Array      # (1, Hp)        f32
    w2: jax.Array      # (Hp, Hp)       bf16  (W2.T, padded)
    b2: jax.Array      # (1, Hp)        f32
    hidden: int
    half: int


def prepare_timestep_embedder_params(w1, b1, w2, b2, *,
                                     frequency_embedding_size=256,
                                     max_period=10000.0):
    """One-time weight preparation, hoisted out of the per-call path.

    w1: (hidden, frequency_embedding_size)  -- PyTorch nn.Linear layout
    b1: (hidden,)
    w2: (hidden, hidden)                    -- PyTorch nn.Linear layout
    b2: (hidden,)
    """
    assert frequency_embedding_size % 2 == 0, "odd freq dim not supported"
    # TODO(synk): the dim%2 zero-padding branch of timestep_embedding is omitted
    # (frequency_embedding_size defaults to 256, which is even; assert guards it).
    half = frequency_embedding_size // 2
    hidden = w2.shape[0]
    h_pad = _round_up(max(hidden, 128), 128)
    pad_h = h_pad - hidden

    freqs = jnp.exp(
        -math.log(max_period) * jnp.arange(half, dtype=jnp.float32) / half
    ).reshape(1, half)

    # PyTorch (out, in) -> (in, out); pad hidden to a lane-dense multiple of 128.
    # Padded h columns see x @ 0 + 0 -> SiLU(0)=0, padded output columns are 0,
    # so the padding is numerically inert and is sliced off after the kernel.
    w1_t = jnp.pad(jnp.transpose(jnp.asarray(w1, jnp.float32)), ((0, 0), (0, pad_h)))
    w2_t = jnp.pad(jnp.transpose(jnp.asarray(w2, jnp.float32)), ((0, pad_h), (0, pad_h)))
    b1_p = jnp.pad(jnp.asarray(b1, jnp.float32), (0, pad_h)).reshape(1, h_pad)
    b2_p = jnp.pad(jnp.asarray(b2, jnp.float32), (0, pad_h)).reshape(1, h_pad)

    return TimestepEmbedderParams(
        freqs=freqs,
        w1=w1_t.astype(jnp.bfloat16),
        b1=b1_p,
        w2=w2_t.astype(jnp.bfloat16),
        b2=b2_p,
        hidden=int(hidden),
        half=int(half),
    )


def _timestep_embedder_kernel(t_ref, freqs_ref, w1_ref, b1_ref, w2_ref, b2_ref,
                              out_ref, *, half, fuse_layer1):
    # t_ref:     (TN, 1)         f32
    # freqs_ref: (1, half)       f32
    # w1_ref:    (2*half, Hp)    bf16  ([cos-rows; sin-rows] of W1.T)
    # b1_ref:    (1, Hp)         f32
    # w2_ref:    (Hp, Hp)        bf16
    # b2_ref:    (1, Hp)         f32
    # out_ref:   (TN, Hp)        f32 or bf16
    t = t_ref[...]                                # (TN, 1)   f32
    args = t * freqs_ref[...]                     # (TN, half) f32 phase

    # NOTE: sin/cos lower to VPU polynomials (not EUP); at these sizes the
    # kernel is weight-DMA / MXU bound so that VALU work is hidden.
    cos_a = jnp.cos(args).astype(jnp.bfloat16)
    sin_a = jnp.sin(args).astype(jnp.bfloat16)

    if fuse_layer1:
        # half % 128 == 0: the concat lands exactly on a lane-tile boundary, so
        # it is layout-only, and a single K=2*half dot fills the 256-deep MXU
        # (v6e/v7x) while also dropping one full-width f32 add.
        emb = jnp.concatenate([cos_a, sin_a], axis=-1)          # (TN, 2*half)
        h = jnp.dot(emb, w1_ref[...], preferred_element_type=jnp.float32)
    else:
        h = jnp.dot(cos_a, w1_ref[0:half, :], preferred_element_type=jnp.float32)
        h = h + jnp.dot(sin_a, w1_ref[half:2 * half, :],
                        preferred_element_type=jnp.float32)
    h = h + b1_ref[...]

    # SiLU in f32 (v5e VPU/EUP have no bf16 element-wise path).
    h = h * jax.nn.sigmoid(h)

    out = jnp.dot(h.astype(jnp.bfloat16), w2_ref[...],
                  preferred_element_type=jnp.float32) + b2_ref[...]
    out_ref[...] = out.astype(out_ref.dtype)


def timestep_embedder_apply(t, params: TimestepEmbedderParams, *,
                            block_n=256, out_dtype=jnp.float32):
    """Apply the kernel to timesteps `t` using prepared params.  Returns (N, hidden)."""
    half = int(params.half)
    hidden = int(params.hidden)
    h_pad = params.w2.shape[0]
    n = t.shape[0]

    # --- balanced N tiling ---------------------------------------------------
    n_steps = max(_cdiv(n, block_n), 1)
    if n >= 128:
        # >=2 grid steps lets v7x megacore shard the "parallel" axis across its
        # two TensorCores once the kernel is compute-bound.
        n_steps = max(n_steps, 2)
    tn = _round_up(_cdiv(n, n_steps), 8)
    n_pad = _round_up(n, tn)          # padding waste stays < 8 rows per step
    grid = (n_pad // tn,)

    t_p = jnp.pad(jnp.asarray(t, jnp.float32), (0, n_pad - n)).reshape(n_pad, 1)

    fuse_layer1 = (half % 128 == 0)
    kernel = functools.partial(_timestep_embedder_kernel,
                               half=half, fuse_layer1=fuse_layer1)

    out_itemsize = jnp.dtype(out_dtype).itemsize

    # Advisory cost estimate so XLA can overlap this small HBM-bound kernel.
    weight_hbm_bytes = (2 * half * h_pad + h_pad * h_pad) * 2 + (half + 2 * h_pad) * 4
    cost = pl.CostEstimate(
        flops=2 * n_pad * (2 * half * h_pad + h_pad * h_pad),
        transcendentals=n_pad * (2 * half + h_pad),
        bytes_accessed=weight_hbm_bytes + n_pad * (4 + h_pad * out_itemsize),
    )

    def run(single_buffer_weights):
        # VMEM budget derived from the actual buffers (matters on v7x: 64 MiB).
        wbuf = 1 if single_buffer_weights else 2
        weight_vmem = wbuf * (
            _vmem_tile_bytes((1, half), 4)
            + _vmem_tile_bytes((2 * half, h_pad), 2)
            + 2 * _vmem_tile_bytes((1, h_pad), 4)
            + _vmem_tile_bytes((h_pad, h_pad), 2))
        io_vmem = 2 * (_vmem_tile_bytes((tn, 1), 4)
                       + _vmem_tile_bytes((tn, h_pad), out_itemsize))
        vmem_limit = max(weight_vmem + io_vmem + (4 << 20), 16 << 20)

        try:
            vmem_cap = pltpu.get_tpu_info().vmem_capacity_bytes
        except Exception:
            vmem_cap = None
        if vmem_cap is not None and vmem_limit > vmem_cap:
            raise ValueError(
                f"TimestepEmbedder needs ~{vmem_limit} B VMEM but the device has "
                f"{vmem_cap} B per core; reduce hidden or block_n.")

        if single_buffer_weights:
            def resident(shape):
                return pl.BlockSpec(shape, lambda i: (0, 0),
                                    pipeline_mode=pl.Buffered(1))
        else:
            def resident(shape):
                return pl.BlockSpec(shape, lambda i: (0, 0))

        return pl.pallas_call(
            kernel,
            out_shape=jax.ShapeDtypeStruct((n_pad, h_pad), out_dtype),
            grid=grid,
            in_specs=[
                pl.BlockSpec((tn, 1), lambda i: (i, 0)),      # t   (pipelined)
                resident((1, half)),                          # freqs (resident)
                resident((2 * half, h_pad)),                  # W1.T [cos; sin]
                resident((1, h_pad)),                         # b1
                resident((h_pad, h_pad)),                     # W2.T
                resident((1, h_pad)),                         # b2
            ],
            out_specs=pl.BlockSpec((tn, h_pad), lambda i: (i, 0)),
            compiler_params=pltpu.CompilerParams(
                dimension_semantics=("parallel",),
                vmem_limit_bytes=int(vmem_limit),
            ),
            cost_estimate=cost,
        )(t_p, params.freqs, params.w1, params.b1, params.w2, params.b2)

    if hasattr(pl, "Buffered"):
        try:
            out_padded = run(True)
        except Exception:
            # Fallback if this jax version rejects single-buffered (Buffered(1))
            # pipeline mode for grid-invariant operands.
            out_padded = run(False)
    else:
        out_padded = run(False)

    if n_pad == n and h_pad == hidden:
        return out_padded
    return out_padded[:n, :hidden]


def timestep_embedder(t, w1, b1, w2, b2, *, frequency_embedding_size=256,
                      max_period=10000.0, block_n=256, out_dtype=jnp.float32):
    """One-shot convenience wrapper.  Prefer preparing params once and reusing
    timestep_embedder_apply for repeated calls (weight prep dominates otherwise)."""
    params = prepare_timestep_embedder_params(
        w1, b1, w2, b2, frequency_embedding_size=frequency_embedding_size,
        max_period=max_period)
    return timestep_embedder_apply(t, params, block_n=block_n, out_dtype=out_dtype)


if __name__ == "__main__":
    # Small shapes consistent with the module: N=8 timesteps, hidden=32,
    # frequency_embedding_size=256.
    N = 8
    HIDDEN = 32
    FREQ = 256

    key = jax.random.PRNGKey(0)
    k_t, k_w1, k_b1, k_w2, k_b2 = jax.random.split(key, 5)

    # Parameters in PyTorch nn.Linear layout: (out_features, in_features).
    t = jax.random.uniform(k_t, (N,), dtype=jnp.float32) * 1000.0
    w1 = jax.random.normal(k_w1, (HIDDEN, FREQ), dtype=jnp.float32) * 0.02
    b1 = jax.random.normal(k_b1, (HIDDEN,), dtype=jnp.float32) * 0.02
    w2 = jax.random.normal(k_w2, (HIDDEN, HIDDEN), dtype=jnp.float32) * 0.02
    b2 = jax.random.normal(k_b2, (HIDDEN,), dtype=jnp.float32) * 0.02

    # One-time weight prep (hoisted out of the per-call path), then apply.
    params = prepare_timestep_embedder_params(w1, b1, w2, b2,
                                              frequency_embedding_size=FREQ)
    out = timestep_embedder_apply(t, params)
    out = jax.block_until_ready(out)
    assert out.shape == (N, HIDDEN)

    # Reference 1: same math with matched precision (bf16 at MXU boundaries,
    # f32 elsewhere) -> should agree tightly with the kernel.
    half = FREQ // 2
    freqs = jnp.exp(-math.log(10000.0) * jnp.arange(half, dtype=jnp.float32) / half)
    args = t[:, None] * freqs[None, :]
    emb_bf = jnp.concatenate([jnp.cos(args), jnp.sin(args)], axis=-1).astype(jnp.bfloat16)
    h_ref = jnp.dot(emb_bf, w1.T.astype(jnp.bfloat16),
                    preferred_element_type=jnp.float32) + b1
    h_ref = h_ref * jax.nn.sigmoid(h_ref)
    ref_bf16 = jnp.dot(h_ref.astype(jnp.bfloat16), w2.T.astype(jnp.bfloat16),
                       preferred_element_type=jnp.float32) + b2
    assert jnp.allclose(out, ref_bf16, atol=1e-3, rtol=1e-3)

    # Reference 2: pure-f32 PyTorch-equivalent math (loose tolerance, since the
    # kernel uses bf16 weights at the MXU).
    emb = jnp.concatenate([jnp.cos(args), jnp.sin(args)], axis=-1)
    h32 = emb @ w1.T + b1
    h32 = h32 * jax.nn.sigmoid(h32)
    ref_f32 = h32 @ w2.T + b2
    assert jnp.allclose(out, ref_f32, atol=5e-2, rtol=5e-2)

    print("KERNEL_OK")
</pallas_src>

<mosaic_0001>
module attributes {stable_mosaic.version = 11 : i64} {
  func.func @_timestep_embedder_kernel(%arg0: i32, %arg1: memref<8x1xf32, #tpu.memory_space<vmem>>, %arg2: memref<1x128xf32, #tpu.memory_space<vmem>>, %arg3: memref<256x128xbf16, #tpu.memory_space<vmem>>, %arg4: memref<1x128xf32, #tpu.memory_space<vmem>>, %arg5: memref<128x128xbf16, #tpu.memory_space<vmem>>, %arg6: memref<1x128xf32, #tpu.memory_space<vmem>>, %arg7: memref<8x128xf32, #tpu.memory_space<vmem>>) attributes {dimension_semantics = [#tpu.dimension_semantics<parallel>], iteration_bounds = array<i64: 1>, scalar_prefetch = 0 : i64, scratch_operands = 0 : i64, tpu.core_type = #tpu.core_type<tc>, window_params = [{transform_indices = @transform_0, window_bounds = array<i64: 8, 1>}, {pipeline_mode = #tpu.pipeline_mode<synchronous>, transform_indices = @transform_1, window_bounds = array<i64: 1, 128>}, {pipeline_mode = #tpu.pipeline_mode<synchronous>, transform_indices = @transform_2, window_bounds = array<i64: 256, 128>}, {pipeline_mode = #tpu.pipeline_mode<synchronous>, transform_indices = @transform_3, window_bounds = array<i64: 1, 128>}, {pipeline_mode = #tpu.pipeline_mode<synchronous>, transform_indices = @transform_4, window_bounds = array<i64: 128, 128>}, {pipeline_mode = #tpu.pipeline_mode<synchronous>, transform_indices = @transform_5, window_bounds = array<i64: 1, 128>}, {transform_indices = @transform_6, window_bounds = array<i64: 8, 128>}]} {
    %c0 = arith.constant 0 : index
    %c0_0 = arith.constant 0 : index
    %0 = vector.load %arg1[%c0, %c0_0] : memref<8x1xf32, #tpu.memory_space<vmem>>, vector<8x1xf32>
    %c0_1 = arith.constant 0 : index
    %c0_2 = arith.constant 0 : index
    %1 = vector.load %arg2[%c0_1, %c0_2] : memref<1x128xf32, #tpu.memory_space<vmem>>, vector<1x128xf32>
    %2 = vector.broadcast %0 : vector<8x1xf32> to vector<8x128xf32>
    %3 = vector.broadcast %1 : vector<1x128xf32> to vector<8x128xf32>
    %4 = arith.mulf %2, %3 : vector<8x128xf32>
    %5 = math.cos %4 : vector<8x128xf32>
    %6 = arith.truncf %5 : vector<8x128xf32> to vector<8x128xbf16>
    %7 = math.sin %4 : vector<8x128xf32>
    %8 = arith.truncf %7 : vector<8x128xf32> to vector<8x128xbf16>
    %9 = tpu.concatenate %6, %8 in 1 : vector<8x128xbf16>, vector<8x128xbf16> -> vector<8x256xbf16>
    %c0_3 = arith.constant 0 : index
    %c0_4 = arith.constant 0 : index
    %10 = vector.load %arg3[%c0_3, %c0_4] : memref<256x128xbf16, #tpu.memory_space<vmem>>, vector<256x128xbf16>
    %cst = arith.constant dense<0.000000e+00> : vector<8x128xf32>
    %11 = tpu.matmul %9, %10, %cst {dimension_numbers = #tpu.dot_dimension_numbers<[1], [0], [0], [1], [0, 0, 1, 1], [], []>} : vector<8x256xbf16>, vector<256x128xbf16>, vector<8x128xf32> -> vector<8x128xf32>
    %c0_5 = arith.constant 0 : index
    %c0_6 = arith.constant 0 : index
    %12 = vector.load %arg4[%c0_5, %c0_6] : memref<1x128xf32, #tpu.memory_space<vmem>>, vector<1x128xf32>
    %13 = vector.broadcast %12 : vector<1x128xf32> to vector<8x128xf32>
    %14 = arith.addf %11, %13 : vector<8x128xf32>
    %15 = arith.negf %14 : vector<8x128xf32>
    %16 = math.exp %15 : vector<8x128xf32>
    %cst_7 = arith.constant 1.000000e+00 : f32
    %17 = vector.broadcast %cst_7 : f32 to vector<8x128xf32>
    %18 = arith.addf %17, %16 : vector<8x128xf32>
    %19 = arith.divf %17, %18 : vector<8x128xf32>
    %20 = arith.mulf %14, %19 : vector<8x128xf32>
    %21 = arith.truncf %20 : vector<8x128xf32> to vector<8x128xbf16>
    %c0_8 = arith.constant 0 : index
    %c0_9 = arith.constant 0 : index
    %22 = vector.load %arg5[%c0_8, %c0_9] : memref<128x128xbf16, #tpu.memory_space<vmem>>, vector<128x128xbf16>
    %cst_10 = arith.constant dense<0.000000e+00> : vector<8x128xf32>
    %23 = tpu.matmul %21, %22, %cst_10 {dimension_numbers = #tpu.dot_dimension_numbers<[1], [0], [0], [1], [0, 0, 1, 1], [], []>} : vector<8x128xbf16>, vector<128x128xbf16>, vector<8x128xf32> -> vector<8x128xf32>
    %c0_11 = arith.constant 0 : index
    %c0_12 = arith.constant 0 : index
    %24 = vector.load %arg6[%c0_11, %c0_12] : memref<1x128xf32, #tpu.memory_space<vmem>>, vector<1x128xf32>
    %25 = vector.broadcast %24 : vector<1x128xf32> to vector<8x128xf32>
    %26 = arith.addf %23, %25 : vector<8x128xf32>
    %c0_13 = arith.constant 0 : index
    %c0_14 = arith.constant 0 : index
    %27 = vector.load %arg7[%c0_13, %c0_14] : memref<8x128xf32, #tpu.memory_space<vmem>>, vector<8x128xf32>
    tpu.vector_store %arg7[%c0_13, %c0_14], %26 {strides = array<i32>} : memref<8x128xf32, #tpu.memory_space<vmem>>, vector<8x128xf32>,
    return
  }
  func.func @transform_0(%arg0: i32) -> (i32, i32) {
    %c0_i32 = arith.constant 0 : i32
    %c0_i32_0 = arith.constant 0 : i32
    return %arg0, %c0_i32 : i32, i32
  }
  func.func @transform_1(%arg0: i32) -> (i32, i32) {
    %c0_i32 = arith.constant 0 : i32
    %c0_i32_0 = arith.constant 0 : i32
    %c0_i32_1 = arith.constant 0 : i32
    return %c0_i32, %c0_i32_0 : i32, i32
  }
  func.func @transform_2(%arg0: i32) -> (i32, i32) {
    %c0_i32 = arith.constant 0 : i32
    %c0_i32_0 = arith.constant 0 : i32
    %c0_i32_1 = arith.constant 0 : i32
    return %c0_i32, %c0_i32_0 : i32, i32
  }
  func.func @transform_3(%arg0: i32) -> (i32, i32) {
    %c0_i32 = arith.constant 0 : i32
    %c0_i32_0 = arith.constant 0 : i32
    %c0_i32_1 = arith.constant 0 : i32
    return %c0_i32, %c0_i32_0 : i32, i32
  }
  func.func @transform_4(%arg0: i32) -> (i32, i32) {
    %c0_i32 = arith.constant 0 : i32
    %c0_i32_0 = arith.constant 0 : i32
    %c0_i32_1 = arith.constant 0 : i32
    return %c0_i32, %c0_i32_0 : i32, i32
  }
  func.func @transform_5(%arg0: i32) -> (i32, i32) {
    %c0_i32 = arith.constant 0 : i32
    %c0_i32_0 = arith.constant 0 : i32
    %c0_i32_1 = arith.constant 0 : i32
    return %c0_i32, %c0_i32_0 : i32, i32
  }
  func.func @transform_6(%arg0: i32) -> (i32, i32) {
    %c0_i32 = arith.constant 0 : i32
    %c0_i32_0 = arith.constant 0 : i32
    return %arg0, %c0_i32 : i32, i32
  }
}

module attributes {stable_mosaic.version = 11 : i64} {
  func.func @_timestep_embedder_kernel(%arg0: i32, %arg1: memref<8x1xf32, #tpu.memory_space<vmem>>, %arg2: memref<1x128xf32, #tpu.memory_space<vmem>>, %arg3: memref<256x128xbf16, #tpu.memory_space<vmem>>, %arg4: memref<1x128xf32, #tpu.memory_space<vmem>>, %arg5: memref<128x128xbf16, #tpu.memory_space<vmem>>, %arg6: memref<1x128xf32, #tpu.memory_space<vmem>>, %arg7: memref<8x128xf32, #tpu.memory_space<vmem>>) attributes {dimension_semantics = [#tpu.dimension_semantics<parallel>], iteration_bounds = array<i64: 1>, scalar_prefetch = 0 : i64, scratch_operands = 0 : i64, tpu.core_type = #tpu.core_type<tc>, window_params = [{transform_indices = @transform_0, window_bounds = array<i64: 8, 1>}, {pipeline_mode = #tpu.pipeline_mode<synchronous>, transform_indices = @transform_1, window_bounds = array<i64: 1, 128>}, {pipeline_mode = #tpu.pipeline_mode<synchronous>, transform_indices = @transform_2, window_bounds = array<i64: 256, 128>}, {pipeline_mode = #tpu.pipeline_mode<synchronous>, transform_indices = @transform_3, window_bounds = array<i64: 1, 128>}, {pipeline_mode = #tpu.pipeline_mode<synchronous>, transform_indices = @transform_4, window_bounds = array<i64: 128, 128>}, {pipeline_mode = #tpu.pipeline_mode<synchronous>, transform_indices = @transform_5, window_bounds = array<i64: 1, 128>}, {transform_indices = @transform_6, window_bounds = array<i64: 8, 128>}]} {
    %c0 = arith.constant 0 : index
    %c0_0 = arith.constant 0 : index
    %0 = vector.load %arg1[%c0, %c0_0] : memref<8x1xf32, #tpu.memory_space<vmem>>, vector<8x1xf32>
    %c0_1 = arith.constant 0 : index
    %c0_2 = arith.constant 0 : index
    %1 = vector.load %arg2[%c0_1, %c0_2] : memref<1x128xf32, #tpu.memory_space<vmem>>, vector<1x128xf32>
    %2 = vector.broadcast %0 : vector<8x1xf32> to vector<8x128xf32>
    %3 = vector.broadcast %1 : vector<1x128xf32> to vector<8x128xf32>
    %4 = arith.mulf %2, %3 : vector<8x128xf32>
    %5 = math.cos %4 : vector<8x128xf32>
    %6 = arith.truncf %5 : vector<8x128xf32> to vector<8x128xbf16>
    %7 = math.sin %4 : vector<8x128xf32>
    %8 = arith.truncf %7 : vector<8x128xf32> to vector<8x128xbf16>
    %9 = tpu.concatenate %6, %8 in 1 : vector<8x128xbf16>, vector<8x128xbf16> -> vector<8x256xbf16>
    %c0_3 = arith.constant 0 : index
    %c0_4 = arith.constant 0 : index
    %10 = vector.load %arg3[%c0_3, %c0_4] : memref<256x128xbf16, #tpu.memory_space<vmem>>, vector<256x128xbf16>
    %cst = arith.constant dense<0.000000e+00> : vector<8x128xf32>
    %11 = tpu.matmul %9, %10, %cst {dimension_numbers = #tpu.dot_dimension_numbers<[1], [0], [0], [1], [0, 0, 1, 1], [], []>} : vector<8x256xbf16>, vector<256x128xbf16>, vector<8x128xf32> -> vector<8x128xf32>
    %c0_5 = arith.constant 0 : index
    %c0_6 = arith.constant 0 : index
    %12 = vector.load %arg4[%c0_5, %c0_6] : memref<1x128xf32, #tpu.memory_space<vmem>>, vector<1x128xf32>
    %13 = vector.broadcast %12 : vector<1x128xf32> to vector<8x128xf32>
    %14 = arith.addf %11, %13 : vector<8x128xf32>
    %15 = arith.negf %14 : vector<8x128xf32>
    %16 = math.exp %15 : vector<8x128xf32>
    %cst_7 = arith.constant 1.000000e+00 : f32
    %17 = vector.broadcast %cst_7 : f32 to vector<8x128xf32>
    %18 = arith.addf %17, %16 : vector<8x128xf32>
    %19 = arith.divf %17, %18 : vector<8x128xf32>
    %20 = arith.mulf %14, %19 : vector<8x128xf32>
    %21 = arith.truncf %20 : vector<8x128xf32> to vector<8x128xbf16>
    %c0_8 = arith.constant 0 : index
    %c0_9 = arith.constant 0 : index
    %22 = vector.load %arg5[%c0_8, %c0_9] : memref<128x128xbf16, #tpu.memory_space<vmem>>, vector<128x128xbf16>
    %cst_10 = arith.constant dense<0.000000e+00> : vector<8x128xf32>
    %23 = tpu.matmul %21, %22, %cst_10 {dimension_numbers = #tpu.dot_dimension_numbers<[1], [0], [0], [1], [0, 0, 1, 1], [], []>} : vector<8x128xbf16>, vector<128x128xbf16>, vector<8x128xf32> -> vector<8x128xf32>
    %c0_11 = arith.constant 0 : index
    %c0_12 = arith.constant 0 : index
    %24 = vector.load %arg6[%c0_11, %c0_12] : memref<1x128xf32, #tpu.memory_space<vmem>>, vector<1x128xf32>
    %25 = vector.broadcast %24 : vector<1x128xf32> to vector<8x128xf32>
    %26 = arith.addf %23, %25 : vector<8x128xf32>
    %c0_13 = arith.constant 0 : index
    %c0_14 = arith.constant 0 : index
    %27 = vector.load %arg7[%c0_13, %c0_14] : memref<8x128xf32, #tpu.memory_space<vmem>>, vector<8x128xf32>
    tpu.vector_store %arg7[%c0_13, %c0_14], %26 {strides = array<i32>} : memref<8x128xf32, #tpu.memory_space<vmem>>, vector<8x128xf32>,
    return
  }
  func.func @transform_0(%arg0: i32) -> (i32, i32) {
    %c0_i32 = arith.constant 0 : i32
    %c0_i32_0 = arith.constant 0 : i32
    return %arg0, %c0_i32 : i32, i32
  }
  func.func @transform_1(%arg0: i32) -> (i32, i32) {
    %c0_i32 = arith.constant 0 : i32
    %c0_i32_0 = arith.constant 0 : i32
    %c0_i32_1 = arith.constant 0 : i32
    return %c0_i32, %c0_i32_0 : i32, i32
  }
  func.func @transform_2(%arg0: i32) -> (i32, i32) {
    %c0_i32 = arith.constant 0 : i32
    %c0_i32_0 = arith.constant 0 : i32
    %c0_i32_1 = arith.constant 0 : i32
    return %c0_i32, %c0_i32_0 : i32, i32
  }
  func.func @transform_3(%arg0: i32) -> (i32, i32) {
    %c0_i32 = arith.constant 0 : i32
    %c0_i32_0 = arith.constant 0 : i32
    %c0_i32_1 = arith.constant 0 : i32
    return %c0_i32, %c0_i32_0 : i32, i32
  }
  func.func @transform_4(%arg0: i32) -> (i32, i32) {
    %c0_i32 = arith.constant 0 : i32
    %c0_i32_0 = arith.constant 0 : i32
    %c0_i32_1 = arith.constant 0 : i32
    return %c0_i32, %c0_i32_0 : i32, i32
  }
  func.func @transform_5(%arg0: i32) -> (i32, i32) {
    %c0_i32 = arith.constant 0 : i32
    %c0_i32_0 = arith.constant 0 : i32
    %c0_i32_1 = arith.constant 0 : i32
    return %c0_i32, %c0_i32_0 : i32, i32
  }
  func.func @transform_6(%arg0: i32) -> (i32, i32) {
    %c0_i32 = arith.constant 0 : i32
    %c0_i32_0 = arith.constant 0 : i32
    return %arg0, %c0_i32 : i32, i32
  }
}

</mosaic_0001>

<bundles_post_ra>
// kernel: tpu_custom_call.1
= control target key start
LH: loop header
LB: loop body
LE: loop exit
PB: predicated region body
PF: predicated region fallthrough
CT: control target
= control target key end

     0   :  { %11 = vsyncpa [#allocation3], 0  ;;  %s882_s0 = inlined_call_operand.vmem [shape: f32[8,1], index: 0, kind: input, shape index: {}]   ;;  %s883_s1 = inlined_call_operand.vmem [shape: f32[1,128], index: 1, kind: input, shape index: {}]   ;;  %s884_s2 = inlined_call_operand.hbm [shape: bf16[256,128], index: 2, kind: input, shape index: {}]   ;;  %s885_s3 = inlined_call_operand.vmem [shape: f32[1,128], index: 3, kind: input, shape index: {}]   ;;  %s886_s4 = inlined_call_operand.hbm [shape: bf16[128,128], index: 4, kind: input, shape index: {}]   ;;  %s887_s5 = inlined_call_operand.vmem [shape: f32[1,128], index: 5, kind: input, shape index: {}]   ;;  %s888_s6 = inlined_call_operand.hbm [shape: f32[8,128], index: 6, kind: output, shape index: {}]  }
   0x1   :  { %12 = vsyncpa [#allocation6], 0 }
   0x2   :  { %13 = vsyncpa [#allocation4], 0  ;;  %s791_s21 = smov [#allocation2]  }
   0x3   :  { %s23_s22 = sshll.u32 %s791_s21, 4  ;;  %s24_s22 = int_to_ptr.vmem [resolvable:$true] %s23_s22 }
   0x4   :  { %s733_s23 = scalar_lea.vmem %s24_s22, 2048  ;;  %p738_p1 = scmp.lt.s32.totalorder %s24_s22, %s24_s22 }
   0x5   :  { %p734_p0 = scmp.ne.s32.totalorder %s24_s22, %s733_s23  ;;  %p739_p2 = scmp.lt.s32.totalorder %s733_s23, %s733_s23 }
   0x7   :  { %p740_p3 = por %p739_p2, %p738_p1 }
   0x9   :  { %p741_p4 = pnand %p740_p3, %p734_p0 }
   0xb   :  { %744 = shalt.err (!%p741_p4)
}
   0xc   :  { %s792_s24 = smov 64   ;;  %s793_s25 = smov 4  }
   0xd   :  { %29 = dma.hbm_to_vmem [thread:$0]  %s884_s2, 2048, %s24_s22, [#allocation3], %s792_s24, %s792_s24, %s793_s25  }
   0xe   :  { %s794_s28 = smov [#allocation5]  }
   0xf   :  { %s37_s29 = sshll.u32 %s794_s28, 4  ;;  %s38_s29 = int_to_ptr.vmem [resolvable:$true] %s37_s29 }
  0x10   :  { %s753_s30 = scalar_lea.vmem %s38_s29, 1024  ;;  %p758_p6 = scmp.lt.s32.totalorder %s38_s29, %s38_s29 }
  0x11   :  { %p754_p5 = scmp.ne.s32.totalorder %s38_s29, %s753_s30  ;;  %p759_p7 = scmp.lt.s32.totalorder %s753_s30, %s753_s30 }
  0x13   :  { %p760_p8 = por %p759_p7, %p758_p6 }
  0x15   :  { %p761_p9 = pnand %p760_p8, %p754_p5 }
  0x17   :  { %764 = shalt.err (!%p761_p9)
}
  0x18   :  { %43 = dma.hbm_to_vmem [thread:$0]  %s886_s4, 1024, %s38_s29, [#allocation6], %s792_s24, %s792_s24, %s793_s25  }
  0x19   :  { %785 = dma.done.wait [#allocation3], 2048  }
  0x1a   :  { %786 = vsyncadd [#allocation3], 4294965248 }
  0x1b   :  { %787 = dma.done.wait [#allocation6], 1024  }
  0x1c   :  { %788 = vsyncadd [#allocation6], 4294966272  ;;  %v795_v0 = vmov 0   ;;  %v53_v1 = vld [vmem:[%s882_s0] sm:$0xff]  ;;  %v693_v2 = vld [vmem:[#allocation2 + $0x78] sm:$0xff]   ;;  %s804_s13 = smov [#allocation7]  }
  0x1d   :  { %692 = vset.pattern.permute.xlu0 %v795_v0  ;;  %v694_v3 = vld [vmem:[#allocation2 + $0x38] sm:$0xff]   ;;  %v695_v4 = vld [vmem:[#allocation2 + $0x70] sm:$0xff]   ;;  %623 = vmatprep.subr.bf16.mxu0 %v693_v2  ;;  %v697_v6 = vld [vmem:[#allocation2 + $0x68] sm:$0xff]   ;;  %v796_v32 = vmov 2102212464  }
  0x1e   :  { %57 = vperm.xlu0 %692, %v53_v1   ;;  %624 = vmatpush3.bf16.msra.mxu0 %v694_v3  ;;  %v696_v5 = vld [vmem:[#allocation2 + $0x30] sm:$0xff]   ;;  %v698_v7 = vld [vmem:[#allocation2 + $0x28] sm:$0xff]   ;;  %v699_v8 = vld [vmem:[#allocation2 + $0x60] sm:$0xff]   ;;  %v797_v34 = vmov 920167782  }
  0x1f   :  { %625 = vmatprep.subr.bf16.mxu0 %v695_v4  ;;  %v700_v9 = vld [vmem:[#allocation2 + $0x20] sm:$0xff]   ;;  %v701_v10 = vld [vmem:[#allocation2 + $0x58] sm:$0xff]   ;;  %v703_v12 = vld [vmem:[#allocation2 + $0x50] sm:$0xff]   ;;  %v798_v38 = vmov 1326507024  }
  0x20   :  { %v702_v11 = vld [vmem:[#allocation2 + $0x18] sm:$0xff]   ;;  %v704_v13 = vld [vmem:[#allocation2 + $0x10] sm:$0xff]   ;;  %v705_v14 = vld [vmem:[#allocation2 + $0x48] sm:$0xff]   ;;  %v799_v40 = vmov 683565275  }
  0x21   :  { %v706_v15 = vld [vmem:[#allocation2 + $0x8] sm:$0xff]   ;;  %v707_v16 = vld [vmem:[#allocation2 + $0x40] sm:$0xff]   ;;  %v800_v42 = vmov 2475754826   ;;  %v801_v45 = vmov 2131351028  }
  0x22   :  { %626 = vmatpush3.bf16.msra.mxu0 %v696_v5  ;;  %v708_v17 = vld [vmem:[#allocation2] sm:$0xff]  }
  0x23   :  { %627 = vmatprep.subr.bf16.mxu0 %v697_v6  ;;  %v587_v18 = vld [vmem:[%s883_s1] ss:$0 sm:$0xff] }
  0x26   :  { %628 = vmatpush3.bf16.msra.mxu0 %v698_v7 }
  0x27   :  { %629 = vmatprep.subr.bf16.mxu0 %v699_v8 }
  0x2a   :  { %630 = vmatpush3.bf16.msra.mxu0 %v700_v9 }
  0x2b   :  { %631 = vmatprep.subr.bf16.mxu0 %v701_v10 }
  0x2e   :  { %632 = vmatpush3.bf16.msra.mxu0 %v702_v11 }
  0x2f   :  { %633 = vmatprep.subr.bf16.mxu0 %v703_v12 }
  0x32   :  { %634 = vmatpush3.bf16.msra.mxu0 %v704_v13 }
  0x33   :  { %635 = vmatprep.subr.bf16.mxu0 %v705_v14 }
  0x36   :  { %636 = vmatpush3.bf16.msra.mxu0 %v706_v15 }
  0x37   :  { %637 = vmatprep.subr.bf16.mxu0 %v707_v16 }
  0x3a   :  { %638 = vmatpush3.bf16.msra.mxu0 %v708_v17 }
  0x99   :  { %v58_v19 = vpop.permute.xlu0 %57 }
  0x9a   :  { %v852_v20 = vmul.f32 %v587_v18, %v58_v19 }
  0x9c   :  { %v70_v21 = vand.u32 2139095040, %v852_v20  ;;  %v67_v22 = vand.u32 2147483647, %v852_v20  ;;  %vm69_vm7 = vcmp.lt.s32.totalorder %v852_v20, 0  ;;  %vm159_vm15 = vweird.f32 %v852_v20 }
  0x9e   :  { %v71_v23 = vshrl.u32 %v70_v21, 23  ;;  %v74_v25 = vand.u32 8388607, %v67_v22  ;;  %vm68_vm8 = vcmp.le.f32.partialorder %v67_v22, 0.7853982 }
  0xa0   :  { %v588_v24 = vadd.s32 4294967169, %v71_v23  ;;  %v75_v28 = vor.u32 8388608, %v74_v25 }
  0xa2   :  { %v77_v26 = vadd.s32 1, %v588_v24  ;;  %v115_v36 = vshll.u32 %v75_v28, 8 }
  0xa4   :  { %vm78_vm0 = vcmp.gt.s32.totalorder %v77_v26, 0 }
  0xa5   :  { %v79_v27 = vsel %vm78_vm0, %v77_v26, 0  ;;  %vm803_vm0 = vmmov 0  }
  0xa6   :  { %v81_v29 = vand.u32 31, %v79_v27  ;;  %v80_v30 = vshrl.u32 %v79_v27, 5 }
  0xa8   :  { %v82_v31 = vsub.s32 32, %v81_v29  ;;  %v93_v33 = vshll.u32 %v796_v32, %v81_v29  ;;  %v96_v35 = vshll.u32 %v797_v34, %v81_v29  ;;  %v84_v41 = vshll.u32 %v799_v40, %v81_v29 }
  0xa9   :  { %v87_v44 = vshll.u32 %v800_v42, %v81_v29  ;;  %v90_v47 = vshll.u32 %v801_v45, %v81_v29  ;;  %vm102_vm1 = vcmp.lt.s32.totalorder %v80_v30, 4  ;;  %vm99_vm2 = vcmp.lt.s32.totalorder %v80_v30, 1 }
  0xaa   :  { %v94_v37 = vshrl.u32 %v797_v34, %v82_v31  ;;  %v97_v39 = vshrl.u32 %v798_v38, %v82_v31  ;;  %v85_v43 = vshrl.u32 %v800_v42, %v82_v31  ;;  %v88_v46 = vshrl.u32 %v801_v45, %v82_v31 }
  0xab   :  { %v91_v48 = vshrl.u32 %v796_v32, %v82_v31  ;;  %v83_v52 = vshrl.u32 %v799_v40, %v82_v31  ;;  %vm100_vm3 = vcmp.lt.s32.totalorder %v80_v30, 2  ;;  %vm101_vm4 = vcmp.lt.s32.totalorder %v80_v30, 3 }
  0xac   :  { %v95_v49 = vor.u32 %v94_v37, %v93_v33  ;;  %v98_v50 = vor.u32 %v97_v39, %v96_v35  ;;  %v86_v51 = vor.u32 %v85_v43, %v84_v41  ;;  %v89_v53 = vor.u32 %v88_v46, %v87_v44 }
  0xad   :  { %v92_v54 = vor.u32 %v91_v48, %v90_v47 }
  0xae   :  { %v108_v55 = vsel %vm102_vm1, %v95_v49, 920167782  ;;  %v112_v56 = vsel %vm102_vm1, %v98_v50, 1326507024  ;;  %v107_v58 = vsel %vm99_vm2, %v86_v51, %v89_v53  ;;  %v103_v61 = vsel %vm99_vm2, %v83_v52, %v86_v51 }
  0xaf   :  { %v104_v57 = vsel %vm102_vm1, %v92_v54, 2102212464  ;;  %v109_v59 = vsel %vm101_vm4, %v92_v54, %v108_v55  ;;  %v111_v60 = vsel %vm99_vm2, %v89_v53, %v92_v54  ;;  %v113_v0 = vsel %vm101_vm4, %v95_v49, %v112_v56  ;;  %v709_v56 = vld [vmem:[#allocation5 + $0x38] sm:$0xff]  }
  0xb0   :  { %v105_v62 = vsel %vm101_vm4, %v89_v53, %v104_v57  ;;  %v110_v63 = vsel %vm100_vm3, %v107_v58, %v109_v59  ;;  %v114_v1 = vsel %vm100_vm3, %v111_v60, %v113_v0  ;;  %v802_v57 = vmov 0.0   ;;  %v710_v58 = vld [vmem:[#allocation5 + $0x30] sm:$0xff]   ;;  %v711_v59 = vld [vmem:[#allocation5 + $0x28] sm:$0xff]   ;;  %v713_v60 = vld [vmem:[#allocation5 + $0x18] sm:$0xff]  }
  0xb1   :  { %v858_v2 = vmul.u32.u64.low %v115_v36, %v110_v63  ;;  %v859_v3 = vmul.u32.u64.high %v115_v36, %v110_v63, %v858_v2  ;;  %v861_v4 = vmul.u32.u64.low %v115_v36, %v114_v1  ;;  %v862_v5 = vmul.u32.u64.high %v115_v36, %v114_v1, %v861_v4  ;;  %654 = vmatprep.subr.bf16.mxu1 %v802_v57  ;;  %670 = vmatprep.mubr.msk.bf16.mxu1 %vm803_vm0, %v802_v57  ;;  %v716_v63 = vld [vmem:[#allocation5] sm:$0xff]  }
  0xb2   :  { %v106_v6 = vsel %vm100_vm3, %v103_v61, %v105_v62  ;;  %655 = vmatpush3.bf16.msra.mxu1 %v709_v56  ;;  %v714_v61 = vld [vmem:[#allocation5 + $0x10] sm:$0xff]   ;;  %v715_v62 = vld [vmem:[#allocation5 + $0x8] sm:$0xff]   ;;  %v596_v1 = vld [vmem:[%s885_s3] ss:$0 sm:$0xff]  ;;  %s577_s3 = sshll.u32 %s804_s13, 4  ;;  %s578_s3 = int_to_ptr.vmem [resolvable:$true] %s577_s3 }
  0xb3   :  { %v125_v7 = vadd.s32 1, %v859_v3  ;;  %v122_v8 = vmul.u32 %v115_v36, %v106_v6  ;;  %vm124_vm5 = vc.u32 %v862_v5, %v858_v2  ;;  %v123_v21 = vadd.s32 %v858_v2, %v862_v5  ;;  %656 = vmatprep.subr.bf16.mxu1 %v802_v57  ;;  %s765_s14 = scalar_lea.vmem %s578_s3, 128  ;;  %p770_p11 = scmp.lt.s32.totalorder %s578_s3, %s578_s3 }
  0xb4   :  { %p766_p10 = scmp.ne.s32.totalorder %s578_s3, %s765_s14  ;;  %p771_p12 = scmp.lt.s32.totalorder %s765_s14, %s765_s14 }
  0xb5   :  { %v126_v9 = vsel %vm124_vm5, %v125_v7, %v859_v3 }
  0xb6   :  { %v127_v10 = vadd.s32 %v126_v9, %v122_v8  ;;  %657 = vmatpush3.bf16.msra.mxu1 %v710_v58  ;;  %p772_p13 = por %p771_p12, %p770_p11 }
  0xb7   :  { %658 = vmatprep.subr.bf16.mxu1 %v802_v57 }
  0xb8   :  { %v128_v11 = vadd.s32 536870912, %v127_v10  ;;  %p773_p0 = pnand %p772_p13, %p766_p10 }
  0xba   :  { %v129_v12 = vshrl.u32 %v128_v11, 30  ;;  %659 = vmatpush3.bf16.msra.mxu1 %v711_v59 }
  0xbb   :  { %660 = vmatprep.subr.bf16.mxu1 %v802_v57 }
  0xbc   :  { %v130_v13 = vshll.u32 %v129_v12, 30  ;;  %v153_v35 = vsub.s32 4, %v129_v12 }
  0xbe   :  { %v131_v14 = vsub.s32 %v127_v10, %v130_v13  ;;  %v154_v38 = vsel %vm69_vm7, %v153_v35, %v129_v12  ;;  %v614_v13 = vld [vmem:[%s887_s5] ss:$0 sm:$0xff] }
  0xbf   :  { %v156_v39 = vsel %vm68_vm8, 0, %v154_v38 }
  0xc0   :  { %v133_v15 = vsub.s32 0, %v131_v14  ;;  %v264_v40 = vadd.s32 3, %v156_v39  ;;  %v160_v41 = vand.u32 3, %v156_v39 }
  0xc2   :  { %v589_v16 = vmin.u32 %v133_v15, %v131_v14  ;;  %v265_v42 = vand.u32 3, %v264_v40  ;;  %vm165_vm9 = vcmp.eq.s32.totalorder %v160_v41, 2  ;;  %vm162_vm11 = vcmp.eq.s32.totalorder %v160_v41, 0 }
  0xc3   :  { %vm161_vm13 = vcmp.lt.s32.totalorder %v160_v41, 2 }
  0xc4   :  { %v135_v17 = vclz %v589_v16  ;;  %vm270_vm10 = vcmp.eq.s32.totalorder %v265_v42, 2  ;;  %vm267_vm12 = vcmp.eq.s32.totalorder %v265_v42, 0  ;;  %vm266_vm14 = vcmp.lt.s32.totalorder %v265_v42, 2 }
  0xc6   :  { %v590_v18 = vadd.s32 4294967294, %v135_v17 }
  0xc8   :  { %vm591_vm6 = vcmp.lt.s32.totalorder %v590_v18, 0 }
  0xc9   :  { %v138_v19 = vsel %vm591_vm6, 0, %v590_v18 }
  0xca   :  { %v139_v23 = vsub.s32 32, %v138_v19  ;;  %v143_v24 = vsub.s32 4294967266, %v138_v19  ;;  %v140_v25 = vshll.u32 %v131_v14, %v138_v19 }
  0xcc   :  { %v141_v26 = vshrl.u32 %v123_v21, %v139_v23  ;;  %v144_v27 = vadd.s32 127, %v143_v24 }
  0xce   :  { %v142_v28 = vor.u32 %v141_v26, %v140_v25  ;;  %v145_v29 = vshll.u32 %v144_v27, 23 }
  0xd0   :  { %v146_v30 = vor.u32 4788187, %v145_v29  ;;  %v149_v32 = vcvt.s32.f32 %v142_v28 }
  0xd2   :  { %v147_v31 = vand.u32 2147483647, %v146_v30 }
  0xd4   :  { %v150_v33 = vmul.f32 %v149_v32, %v147_v31 }
  0xd6   :  { %v151_v34 = vxor.u32 2147483648, %v150_v33 }
  0xd8   :  { %v152_v36 = vsel %vm69_vm7, %v151_v34, %v150_v33 }
  0xd9   :  { %v155_v37 = vsel %vm68_vm8, %v852_v20, %v152_v36  ;;  %v712_v20 = vld [vmem:[#allocation5 + $0x20] sm:$0xff]  }
  0xda   :  { %717 = vcosq.f32 %v155_v37  ;;  %661 = vmatpush3.bf16.msra.mxu1 %v712_v20 }
  0xdb   :  { %719 = vsinq.f32 %v155_v37  ;;  %662 = vmatprep.subr.bf16.mxu1 %v802_v57 }
  0xde   :  { %663 = vmatpush3.bf16.msra.mxu1 %v713_v60 }
  0xdf   :  { %664 = vmatprep.subr.bf16.mxu1 %v802_v57 }
  0xe2   :  { %665 = vmatpush3.bf16.msra.mxu1 %v714_v61 }
  0xe3   :  { %666 = vmatprep.subr.bf16.mxu1 %v802_v57 }
  0xe6   :  { %667 = vmatpush3.bf16.msra.mxu1 %v715_v62 }
  0xe7   :  { %v718_v43 = vpop.eup %717  ;;  %668 = vmatprep.subr.bf16.mxu1 %v802_v57 }
  0xe8   :  { %v720_v44 = vpop.eup %719  ;;  %v166_v45 = vxor.u32 2147483648, %v718_v43 }
  0xe9   :  { %v163_v46 = vxor.u32 2147483648, %v720_v44 }
  0xea   :  { %v167_v47 = vsel %vm165_vm9, %v166_v45, %v720_v44  ;;  %v272_v22 = vsel %vm270_vm10, %v166_v45, %v720_v44  ;;  %669 = vmatpush3.bf16.msra.mxu1 %v716_v63 }
  0xeb   :  { %v164_v48 = vsel %vm162_vm11, %v718_v43, %v163_v46  ;;  %v269_v49 = vsel %vm267_vm12, %v718_v43, %v163_v46 }
  0xec   :  { %v168_v50 = vsel %vm161_vm13, %v164_v48, %v167_v47  ;;  %v273_v51 = vsel %vm266_vm14, %v269_v49, %v272_v22 }
  0xed   :  { %v169_v52 = vsel %vm159_vm15, nan, %v168_v50  ;;  %v274_v53 = vsel %vm159_vm15, nan, %v273_v51 }
  0xee   :  { %v170_v54 = vpack.c.bf16 %v169_v52, %v169_v52  ;;  %v275_v55 = vpack.c.bf16 %v274_v53, %v274_v53 }
  0xf0   :  { %443 = vmatprep.mubr.bf16.mxu0 %v275_v55 }
  0xf1   :  { %444 = vmatmul.mubr.bf16.vlgmr.msra.gmra.mxu0 %v170_v54 }
 0x1b1   :  { %v639_v0 = vpop.f32.mrf.mxu0 }
 0x1b3   :  { %v640_v2 = vpop.f32.mrf.mxu0 }
 0x1b4   :  { %v641_v3 = vadd.f32 %v640_v2, %v639_v0 }
 0x1b5   :  { %v642_v4 = vpop.f32.mrf.mxu0 }
 0x1b6   :  { %v446_v5 = vadd.f32 %v641_v3, %v596_v1 }
 0x1b7   :  { %v643_v6 = vpop.f32.mrf.mxu0 }
 0x1b8   :  { %v613_v7 = vmul.f32 -1.442695, %v446_v5 }
 0x1ba   :  { %721 = vpow2.f32 %v613_v7 }
 0x1c7   :  { %v722_v8 = vpop.eup %721 }
 0x1c8   :  { %v454_v9 = vadd.f32 1.0, %v722_v8 }
 0x1ca   :  { %723 = vrcp.f32 %v454_v9 }
 0x1d7   :  { %v724_v10 = vpop.eup %723 }
 0x1d8   :  { %v457_v11 = vmul.f32 %v724_v10, %v446_v5 }
 0x1da   :  { %v458_v12 = vpack.c.bf16 %v457_v11, %v457_v11 }
 0x1dc   :  { %671 = vmatmul.mubr.bf16.vlgmr.msra.gmra.mxu1 %v458_v12 }
 0x29c   :  { %v564_v14 = vpop.f32.mrf.mxu1 }
 0x29d   :  { %v565_v15 = vadd.f32 %v614_v13, %v564_v14 }
 0x29e   :  { %v672_v16 = vpop.f32.mrf.mxu1 }
 0x29f   :  { %570 = vst [vmem:[#allocation7] sm:$0xff] %v565_v15 }
 0x2a0   :  { %v567_v17 = vpop.f32.mrf.mxu1 }
 0x2a1   :  { %776 = shalt.err (!%p773_p0)
}
 0x2a2   :  { %580 = dma.vmem_to_hbm [thread:$0]  %s578_s3, 128, %s888_s6, [#allocation4]   ;;  %v673_v18 = vpop.f32.mrf.mxu1 }
 0x2a3   :  { %789 = dma.done.wait [#allocation4], 128  }
 0x2a4   :  { %790 = vsyncadd [#allocation4], 4294967168 }
 0x2a5   :  { %584 = vsyncpa [#allocation3], 1 }
 0x2a6   :  { %585 = vsyncpa [#allocation6], 1 }
 0x2a7   :  { %586 = vsyncpa [#allocation4], 1 }

// kernel: tpu_custom_call.1
= control target key start
LH: loop header
LB: loop body
LE: loop exit
PB: predicated region body
PF: predicated region fallthrough
CT: control target
= control target key end

     0   :  { %11 = vsyncpa [#allocation3], 0  ;;  %s882_s0 = inlined_call_operand.vmem [shape: f32[8,1], index: 0, kind: input, shape index: {}]   ;;  %s883_s1 = inlined_call_operand.vmem [shape: f32[1,128], index: 1, kind: input, shape index: {}]   ;;  %s884_s2 = inlined_call_operand.hbm [shape: bf16[256,128], index: 2, kind: input, shape index: {}]   ;;  %s885_s3 = inlined_call_operand.vmem [shape: f32[1,128], index: 3, kind: input, shape index: {}]   ;;  %s886_s4 = inlined_call_operand.hbm [shape: bf16[128,128], index: 4, kind: input, shape index: {}]   ;;  %s887_s5 = inlined_call_operand.vmem [shape: f32[1,128], index: 5, kind: input, shape index: {}]   ;;  %s888_s6 = inlined_call_operand.hbm [shape: f32[8,128], index: 6, kind: output, shape index: {}]  }
   0x1   :  { %12 = vsyncpa [#allocation6], 0 }
   0x2   :  { %13 = vsyncpa [#allocation4], 0  ;;  %s791_s21 = smov [#allocation2]  }
   0x3   :  { %s23_s22 = sshll.u32 %s791_s21, 4  ;;  %s24_s22 = int_to_ptr.vmem [resolvable:$true] %s23_s22 }
   0x4   :  { %s733_s23 = scalar_lea.vmem %s24_s22, 2048  ;;  %p738_p1 = scmp.lt.s32.totalorder %s24_s22, %s24_s22 }
   0x5   :  { %p734_p0 = scmp.ne.s32.totalorder %s24_s22, %s733_s23  ;;  %p739_p2 = scmp.lt.s32.totalorder %s733_s23, %s733_s23 }
   0x7   :  { %p740_p3 = por %p739_p2, %p738_p1 }
   0x9   :  { %p741_p4 = pnand %p740_p3, %p734_p0 }
   0xb   :  { %744 = shalt.err (!%p741_p4)
}
   0xc   :  { %s792_s24 = smov 64   ;;  %s793_s25 = smov 4  }
   0xd   :  { %29 = dma.hbm_to_vmem [thread:$0]  %s884_s2, 2048, %s24_s22, [#allocation3], %s792_s24, %s792_s24, %s793_s25  }
   0xe   :  { %s794_s28 = smov [#allocation5]  }
   0xf   :  { %s37_s29 = sshll.u32 %s794_s28, 4  ;;  %s38_s29 = int_to_ptr.vmem [resolvable:$true] %s37_s29 }
  0x10   :  { %s753_s30 = scalar_lea.vmem %s38_s29, 1024  ;;  %p758_p6 = scmp.lt.s32.totalorder %s38_s29, %s38_s29 }
  0x11   :  { %p754_p5 = scmp.ne.s32.totalorder %s38_s29, %s753_s30  ;;  %p759_p7 = scmp.lt.s32.totalorder %s753_s30, %s753_s30 }
  0x13   :  { %p760_p8 = por %p759_p7, %p758_p6 }
  0x15   :  { %p761_p9 = pnand %p760_p8, %p754_p5 }
  0x17   :  { %764 = shalt.err (!%p761_p9)
}
  0x18   :  { %43 = dma.hbm_to_vmem [thread:$0]  %s886_s4, 1024, %s38_s29, [#allocation6], %s792_s24, %s792_s24, %s793_s25  }
  0x19   :  { %785 = dma.done.wait [#allocation3], 2048  }
  0x1a   :  { %786 = vsyncadd [#allocation3], 4294965248 }
  0x1b   :  { %787 = dma.done.wait [#allocation6], 1024  }
  0x1c   :  { %788 = vsyncadd [#allocation6], 4294966272  ;;  %v795_v0 = vmov 0   ;;  %v53_v1 = vld [vmem:[%s882_s0] sm:$0xff]  ;;  %v693_v2 = vld [vmem:[#allocation2 + $0x78] sm:$0xff]   ;;  %s804_s13 = smov [#allocation7]  }
  0x1d   :  { %692 = vset.pattern.permute.xlu0 %v795_v0  ;;  %v694_v3 = vld [vmem:[#allocation2 + $0x38] sm:$0xff]   ;;  %v695_v4 = vld [vmem:[#allocation2 + $0x70] sm:$0xff]   ;;  %623 = vmatprep.subr.bf16.mxu0 %v693_v2  ;;  %v697_v6 = vld [vmem:[#allocation2 + $0x68] sm:$0xff]   ;;  %v796_v32 = vmov 2102212464  }
  0x1e   :  { %57 = vperm.xlu0 %692, %v53_v1   ;;  %624 = vmatpush3.bf16.msra.mxu0 %v694_v3  ;;  %v696_v5 = vld [vmem:[#allocation2 + $0x30] sm:$0xff]   ;;  %v698_v7 = vld [vmem:[#allocation2 + $0x28] sm:$0xff]   ;;  %v699_v8 = vld [vmem:[#allocation2 + $0x60] sm:$0xff]   ;;  %v797_v34 = vmov 920167782  }
  0x1f   :  { %625 = vmatprep.subr.bf16.mxu0 %v695_v4  ;;  %v700_v9 = vld [vmem:[#allocation2 + $0x20] sm:$0xff]   ;;  %v701_v10 = vld [vmem:[#allocation2 + $0x58] sm:$0xff]   ;;  %v703_v12 = vld [vmem:[#allocation2 + $0x50] sm:$0xff]   ;;  %v798_v38 = vmov 1326507024  }
  0x20   :  { %v702_v11 = vld [vmem:[#allocation2 + $0x18] sm:$0xff]   ;;  %v704_v13 = vld [vmem:[#allocation2 + $0x10] sm:$0xff]   ;;  %v705_v14 = vld [vmem:[#allocation2 + $0x48] sm:$0xff]   ;;  %v799_v40 = vmov 683565275  }
  0x21   :  { %v706_v15 = vld [vmem:[#allocation2 + $0x8] sm:$0xff]   ;;  %v707_v16 = vld [vmem:[#allocation2 + $0x40] sm:$0xff]   ;;  %v800_v42 = vmov 2475754826   ;;  %v801_v45 = vmov 2131351028  }
  0x22   :  { %626 = vmatpush3.bf16.msra.mxu0 %v696_v5  ;;  %v708_v17 = vld [vmem:[#allocation2] sm:$0xff]  }
  0x23   :  { %627 = vmatprep.subr.bf16.mxu0 %v697_v6  ;;  %v587_v18 = vld [vmem:[%s883_s1] ss:$0 sm:$0xff] }
  0x26   :  { %628 = vmatpush3.bf16.msra.mxu0 %v698_v7 }
  0x27   :  { %629 = vmatprep.subr.bf16.mxu0 %v699_v8 }
  0x2a   :  { %630 = vmatpush3.bf16.msra.mxu0 %v700_v9 }
  0x2b   :  { %631 = vmatprep.subr.bf16.mxu0 %v701_v10 }
  0x2e   :  { %632 = vmatpush3.bf16.msra.mxu0 %v702_v11 }
  0x2f   :  { %633 = vmatprep.subr.bf16.mxu0 %v703_v12 }
  0x32   :  { %634 = vmatpush3.bf16.msra.mxu0 %v704_v13 }
  0x33   :  { %635 = vmatprep.subr.bf16.mxu0 %v705_v14 }
  0x36   :  { %636 = vmatpush3.bf16.msra.mxu0 %v706_v15 }
  0x37   :  { %637 = vmatprep.subr.bf16.mxu0 %v707_v16 }
  0x3a   :  { %638 = vmatpush3.bf16.msra.mxu0 %v708_v17 }
  0x99   :  { %v58_v19 = vpop.permute.xlu0 %57 }
  0x9a   :  { %v852_v20 = vmul.f32 %v587_v18, %v58_v19 }
  0x9c   :  { %v70_v21 = vand.u32 2139095040, %v852_v20  ;;  %v67_v22 = vand.u32 2147483647, %v852_v20  ;;  %vm69_vm7 = vcmp.lt.s32.totalorder %v852_v20, 0  ;;  %vm159_vm15 = vweird.f32 %v852_v20 }
  0x9e   :  { %v71_v23 = vshrl.u32 %v70_v21, 23  ;;  %v74_v25 = vand.u32 8388607, %v67_v22  ;;  %vm68_vm8 = vcmp.le.f32.partialorder %v67_v22, 0.7853982 }
  0xa0   :  { %v588_v24 = vadd.s32 4294967169, %v71_v23  ;;  %v75_v28 = vor.u32 8388608, %v74_v25 }
  0xa2   :  { %v77_v26 = vadd.s32 1, %v588_v24  ;;  %v115_v36 = vshll.u32 %v75_v28, 8 }
  0xa4   :  { %vm78_vm0 = vcmp.gt.s32.totalorder %v77_v26, 0 }
  0xa5   :  { %v79_v27 = vsel %vm78_vm0, %v77_v26, 0  ;;  %vm803_vm0 = vmmov 0  }
  0xa6   :  { %v81_v29 = vand.u32 31, %v79_v27  ;;  %v80_v30 = vshrl.u32 %v79_v27, 5 }
  0xa8   :  { %v82_v31 = vsub.s32 32, %v81_v29  ;;  %v93_v33 = vshll.u32 %v796_v32, %v81_v29  ;;  %v96_v35 = vshll.u32 %v797_v34, %v81_v29  ;;  %v84_v41 = vshll.u32 %v799_v40, %v81_v29 }
  0xa9   :  { %v87_v44 = vshll.u32 %v800_v42, %v81_v29  ;;  %v90_v47 = vshll.u32 %v801_v45, %v81_v29  ;;  %vm102_vm1 = vcmp.lt.s32.totalorder %v80_v30, 4  ;;  %vm99_vm2 = vcmp.lt.s32.totalorder %v80_v30, 1 }
  0xaa   :  { %v94_v37 = vshrl.u32 %v797_v34, %v82_v31  ;;  %v97_v39 = vshrl.u32 %v798_v38, %v82_v31  ;;  %v85_v43 = vshrl.u32 %v800_v42, %v82_v31  ;;  %v88_v46 = vshrl.u32 %v801_v45, %v82_v31 }
  0xab   :  { %v91_v48 = vshrl.u32 %v796_v32, %v82_v31  ;;  %v83_v52 = vshrl.u32 %v799_v40, %v82_v31  ;;  %vm100_vm3 = vcmp.lt.s32.totalorder %v80_v30, 2  ;;  %vm101_vm4 = vcmp.lt.s32.totalorder %v80_v30, 3 }
  0xac   :  { %v95_v49 = vor.u32 %v94_v37, %v93_v33  ;;  %v98_v50 = vor.u32 %v97_v39, %v96_v35  ;;  %v86_v51 = vor.u32 %v85_v43, %v84_v41  ;;  %v89_v53 = vor.u32 %v88_v46, %v87_v44 }
  0xad   :  { %v92_v54 = vor.u32 %v91_v48, %v90_v47 }
  0xae   :  { %v108_v55 = vsel %vm102_vm1, %v95_v49, 920167782  ;;  %v112_v56 = vsel %vm102_vm1, %v98_v50, 1326507024  ;;  %v107_v58 = vsel %vm99_vm2, %v86_v51, %v89_v53  ;;  %v103_v61 = vsel %vm99_vm2, %v83_v52, %v86_v51 }
  0xaf   :  { %v104_v57 = vsel %vm102_vm1, %v92_v54, 2102212464  ;;  %v109_v59 = vsel %vm101_vm4, %v92_v54, %v108_v55  ;;  %v111_v60 = vsel %vm99_vm2, %v89_v53, %v92_v54  ;;  %v113_v0 = vsel %vm101_vm4, %v95_v49, %v112_v56  ;;  %v709_v56 = vld [vmem:[#allocation5 + $0x38] sm:$0xff]  }
  0xb0   :  { %v105_v62 = vsel %vm101_vm4, %v89_v53, %v104_v57  ;;  %v110_v63 = vsel %vm100_vm3, %v107_v58, %v109_v59  ;;  %v114_v1 = vsel %vm100_vm3, %v111_v60, %v113_v0  ;;  %v802_v57 = vmov 0.0   ;;  %v710_v58 = vld [vmem:[#allocation5 + $0x30] sm:$0xff]   ;;  %v711_v59 = vld [vmem:[#allocation5 + $0x28] sm:$0xff]   ;;  %v713_v60 = vld [vmem:[#allocation5 + $0x18] sm:$0xff]  }
  0xb1   :  { %v858_v2 = vmul.u32.u64.low %v115_v36, %v110_v63  ;;  %v859_v3 = vmul.u32.u64.high %v115_v36, %v110_v63, %v858_v2  ;;  %v861_v4 = vmul.u32.u64.low %v115_v36, %v114_v1  ;;  %v862_v5 = vmul.u32.u64.high %v115_v36, %v114_v1, %v861_v4  ;;  %654 = vmatprep.subr.bf16.mxu1 %v802_v57  ;;  %670 = vmatprep.mubr.msk.bf16.mxu1 %vm803_vm0, %v802_v57  ;;  %v716_v63 = vld [vmem:[#allocation5] sm:$0xff]  }
  0xb2   :  { %v106_v6 = vsel %vm100_vm3, %v103_v61, %v105_v62  ;;  %655 = vmatpush3.bf16.msra.mxu1 %v709_v56  ;;  %v714_v61 = vld [vmem:[#allocation5 + $0x10] sm:$0xff]   ;;  %v715_v62 = vld [vmem:[#allocation5 + $0x8] sm:$0xff]   ;;  %v596_v1 = vld [vmem:[%s885_s3] ss:$0 sm:$0xff]  ;;  %s577_s3 = sshll.u32 %s804_s13, 4  ;;  %s578_s3 = int_to_ptr.vmem [resolvable:$true] %s577_s3 }
  0xb3   :  { %v125_v7 = vadd.s32 1, %v859_v3  ;;  %v122_v8 = vmul.u32 %v115_v36, %v106_v6  ;;  %vm124_vm5 = vc.u32 %v862_v5, %v858_v2  ;;  %v123_v21 = vadd.s32 %v858_v2, %v862_v5  ;;  %656 = vmatprep.subr.bf16.mxu1 %v802_v57  ;;  %s765_s14 = scalar_lea.vmem %s578_s3, 128  ;;  %p770_p11 = scmp.lt.s32.totalorder %s578_s3, %s578_s3 }
  0xb4   :  { %p766_p10 = scmp.ne.s32.totalorder %s578_s3, %s765_s14  ;;  %p771_p12 = scmp.lt.s32.totalorder %s765_s14, %s765_s14 }
  0xb5   :  { %v126_v9 = vsel %vm124_vm5, %v125_v7, %v859_v3 }
  0xb6   :  { %v127_v10 = vadd.s32 %v126_v9, %v122_v8  ;;  %657 = vmatpush3.bf16.msra.mxu1 %v710_v58  ;;  %p772_p13 = por %p771_p12, %p770_p11 }
  0xb7   :  { %658 = vmatprep.subr.bf16.mxu1 %v802_v57 }
  0xb8   :  { %v128_v11 = vadd.s32 536870912, %v127_v10  ;;  %p773_p0 = pnand %p772_p13, %p766_p10 }
  0xba   :  { %v129_v12 = vshrl.u32 %v128_v11, 30  ;;  %659 = vmatpush3.bf16.msra.mxu1 %v711_v59 }
  0xbb   :  { %660 = vmatprep.subr.bf16.mxu1 %v802_v57 }
  0xbc   :  { %v130_v13 = vshll.u32 %v129_v12, 30  ;;  %v153_v35 = vsub.s32 4, %v129_v12 }
  0xbe   :  { %v131_v14 = vsub.s32 %v127_v10, %v130_v13  ;;  %v154_v38 = vsel %vm69_vm7, %v153_v35, %v129_v12  ;;  %v614_v13 = vld [vmem:[%s887_s5] ss:$0 sm:$0xff] }
  0xbf   :  { %v156_v39 = vsel %vm68_vm8, 0, %v154_v38 }
  0xc0   :  { %v133_v15 = vsub.s32 0, %v131_v14  ;;  %v264_v40 = vadd.s32 3, %v156_v39  ;;  %v160_v41 = vand.u32 3, %v156_v39 }
  0xc2   :  { %v589_v16 = vmin.u32 %v133_v15, %v131_v14  ;;  %v265_v42 = vand.u32 3, %v264_v40  ;;  %vm165_vm9 = vcmp.eq.s32.totalorder %v160_v41, 2  ;;  %vm162_vm11 = vcmp.eq.s32.totalorder %v160_v41, 0 }
  0xc3   :  { %vm161_vm13 = vcmp.lt.s32.totalorder %v160_v41, 2 }
  0xc4   :  { %v135_v17 = vclz %v589_v16  ;;  %vm270_vm10 = vcmp.eq.s32.totalorder %v265_v42, 2  ;;  %vm267_vm12 = vcmp.eq.s32.totalorder %v265_v42, 0  ;;  %vm266_vm14 = vcmp.lt.s32.totalorder %v265_v42, 2 }
  0xc6   :  { %v590_v18 = vadd.s32 4294967294, %v135_v17 }
  0xc8   :  { %vm591_vm6 = vcmp.lt.s32.totalorder %v590_v18, 0 }
  0xc9   :  { %v138_v19 = vsel %vm591_vm6, 0, %v590_v18 }
  0xca   :  { %v139_v23 = vsub.s32 32, %v138_v19  ;;  %v143_v24 = vsub.s32 4294967266, %v138_v19  ;;  %v140_v25 = vshll.u32 %v131_v14, %v138_v19 }
  0xcc   :  { %v141_v26 = vshrl.u32 %v123_v21, %v139_v23  ;;  %v144_v27 = vadd.s32 127, %v143_v24 }
  0xce   :  { %v142_v28 = vor.u32 %v141_v26, %v140_v25  ;;  %v145_v29 = vshll.u32 %v144_v27, 23 }
  0xd0   :  { %v146_v30 = vor.u32 4788187, %v145_v29  ;;  %v149_v32 = vcvt.s32.f32 %v142_v28 }
  0xd2   :  { %v147_v31 = vand.u32 2147483647, %v146_v30 }
  0xd4   :  { %v150_v33 = vmul.f32 %v149_v32, %v147_v31 }
  0xd6   :  { %v151_v34 = vxor.u32 2147483648, %v150_v33 }
  0xd8   :  { %v152_v36 = vsel %vm69_vm7, %v151_v34, %v150_v33 }
  0xd9   :  { %v155_v37 = vsel %vm68_vm8, %v852_v20, %v152_v36  ;;  %v712_v20 = vld [vmem:[#allocation5 + $0x20] sm:$0xff]  }
  0xda   :  { %717 = vcosq.f32 %v155_v37  ;;  %661 = vmatpush3.bf16.msra.mxu1 %v712_v20 }
  0xdb   :  { %719 = vsinq.f32 %v155_v37  ;;  %662 = vmatprep.subr.bf16.mxu1 %v802_v57 }
  0xde   :  { %663 = vmatpush3.bf16.msra.mxu1 %v713_v60 }
  0xdf   :  { %664 = vmatprep.subr.bf16.mxu1 %v802_v57 }
  0xe2   :  { %665 = vmatpush3.bf16.msra.mxu1 %v714_v61 }
  0xe3   :  { %666 = vmatprep.subr.bf16.mxu1 %v802_v57 }
  0xe6   :  { %667 = vmatpush3.bf16.msra.mxu1 %v715_v62 }
  0xe7   :  { %v718_v43 = vpop.eup %717  ;;  %668 = vmatprep.subr.bf16.mxu1 %v802_v57 }
  0xe8   :  { %v720_v44 = vpop.eup %719  ;;  %v166_v45 = vxor.u32 2147483648, %v718_v43 }
  0xe9   :  { %v163_v46 = vxor.u32 2147483648, %v720_v44 }
  0xea   :  { %v167_v47 = vsel %vm165_vm9, %v166_v45, %v720_v44  ;;  %v272_v22 = vsel %vm270_vm10, %v166_v45, %v720_v44  ;;  %669 = vmatpush3.bf16.msra.mxu1 %v716_v63 }
  0xeb   :  { %v164_v48 = vsel %vm162_vm11, %v718_v43, %v163_v46  ;;  %v269_v49 = vsel %vm267_vm12, %v718_v43, %v163_v46 }
  0xec   :  { %v168_v50 = vsel %vm161_vm13, %v164_v48, %v167_v47  ;;  %v273_v51 = vsel %vm266_vm14, %v269_v49, %v272_v22 }
  0xed   :  { %v169_v52 = vsel %vm159_vm15, nan, %v168_v50  ;;  %v274_v53 = vsel %vm159_vm15, nan, %v273_v51 }
  0xee   :  { %v170_v54 = vpack.c.bf16 %v169_v52, %v169_v52  ;;  %v275_v55 = vpack.c.bf16 %v274_v53, %v274_v53 }
  0xf0   :  { %443 = vmatprep.mubr.bf16.mxu0 %v275_v55 }
  0xf1   :  { %444 = vmatmul.mubr.bf16.vlgmr.msra.gmra.mxu0 %v170_v54 }
 0x1b1   :  { %v639_v0 = vpop.f32.mrf.mxu0 }
 0x1b3   :  { %v640_v2 = vpop.f32.mrf.mxu0 }
 0x1b4   :  { %v641_v3 = vadd.f32 %v640_v2, %v639_v0 }
 0x1b5   :  { %v642_v4 = vpop.f32.mrf.mxu0 }
 0x1b6   :  { %v446_v5 = vadd.f32 %v641_v3, %v596_v1 }
 0x1b7   :  { %v643_v6 = vpop.f32.mrf.mxu0 }
 0x1b8   :  { %v613_v7 = vmul.f32 -1.442695, %v446_v5 }
 0x1ba   :  { %721 = vpow2.f32 %v613_v7 }
 0x1c7   :  { %v722_v8 = vpop.eup %721 }
 0x1c8   :  { %v454_v9 = vadd.f32 1.0, %v722_v8 }
 0x1ca   :  { %723 = vrcp.f32 %v454_v9 }
 0x1d7   :  { %v724_v10 = vpop.eup %723 }
 0x1d8   :  { %v457_v11 = vmul.f32 %v724_v10, %v446_v5 }
 0x1da   :  { %v458_v12 = vpack.c.bf16 %v457_v11, %v457_v11 }
 0x1dc   :  { %671 = vmatmul.mubr.bf16.vlgmr.msra.gmra.mxu1 %v458_v12 }
 0x29c   :  { %v564_v14 = vpop.f32.mrf.mxu1 }
 0x29d   :  { %v565_v15 = vadd.f32 %v614_v13, %v564_v14 }
 0x29e   :  { %v672_v16 = vpop.f32.mrf.mxu1 }
 0x29f   :  { %570 = vst [vmem:[#allocation7] sm:$0xff] %v565_v15 }
 0x2a0   :  { %v567_v17 = vpop.f32.mrf.mxu1 }
 0x2a1   :  { %776 = shalt.err (!%p773_p0)
}
 0x2a2   :  { %580 = dma.vmem_to_hbm [thread:$0]  %s578_s3, 128, %s888_s6, [#allocation4]   ;;  %v673_v18 = vpop.f32.mrf.mxu1 }
 0x2a3   :  { %789 = dma.done.wait [#allocation4], 128  }
 0x2a4   :  { %790 = vsyncadd [#allocation4], 4294967168 }
 0x2a5   :  { %584 = vsyncpa [#allocation3], 1 }
 0x2a6   :  { %585 = vsyncpa [#allocation6], 1 }
 0x2a7   :  { %586 = vsyncpa [#allocation4], 1 }

</bundles_post_ra>
